<compile_context>
chip_gen: v6e
topology: v6e:2x2x1
jax: 0.10.0
libtpu: 0.0.40
codegen_flags: <defaults>
</compile_context>

<pallas_src>
import functools

import jax
import jax.numpy as jnp
from jax.experimental import pallas as pl
from jax.experimental.pallas import tpu as pltpu

_SINGLE_SHOT_MAX_ROWS = 512   # above this, tile the batch (>= 2 blocks)
_LANES = 128


def _qnet_kernel(x_ref, w1_ref, b1_ref, w2_ref, b2_ref, w3_ref, b3_ref, o_ref):
    # f32 (or bf16) x from HBM; cast to bf16 here on the VPU instead of a
    # separate wrapper-side XLA pass over x. MXU matmuls accumulate in f32;
    # bias add / ReLU stay f32; activations re-cast to bf16 between layers.
    x = x_ref[...].astype(jnp.bfloat16)
    h1 = jnp.dot(x, w1_ref[...], preferred_element_type=jnp.float32) + b1_ref[...]
    h1 = jnp.maximum(h1, 0.0).astype(jnp.bfloat16)
    h2 = jnp.dot(h1, w2_ref[...], preferred_element_type=jnp.float32) + b2_ref[...]
    h2 = jnp.maximum(h2, 0.0).astype(jnp.bfloat16)
    out = jnp.dot(h2, w3_ref[...], preferred_element_type=jnp.float32) + b3_ref[...]
    o_ref[...] = out.astype(o_ref.dtype)


def _round_up(x, m):
    return ((x + m - 1) // m) * m


def _cost_estimate(B, F, H1, H2, O, out_dtype):
    flops = 2 * B * (F * H1 + H1 * H2 + H2 * O)
    out_bytes = jnp.dtype(out_dtype).itemsize
    bytes_accessed = (
        B * F * 4                                # f32 x read (bf16-cast in-kernel)
        + (F * H1 + H1 * H2 + H2 * O) * 2        # bf16 weights
        + (H1 + H2 + O) * 4                      # f32 biases
        + B * O * out_bytes                      # output
    )
    return pl.CostEstimate(flops=flops, transcendentals=0,
                           bytes_accessed=bytes_accessed)


def _vmem_limit_bytes(tb):
    # Every [tb, width<=128] f32 buffer occupies tb*128*4 B of VMEM due to the
    # (8,128) lane tiling (narrow minor dims pad to 128 lanes). Budget:
    # 2x double-buffered x tiles + 2x double-buffered out tiles + ~4 tiles of
    # matmul/activation temporaries + weights/slack; capped safely under v7x's
    # 64 MiB physical VMEM.
    row = _LANES * 4
    return min(8 * tb * row + (4 << 20), 56 << 20)


@functools.partial(jax.jit, static_argnames=("batch_tile", "out_dtype"))
def linear_qnet_forward(x, w1, b1, w2, b2, w3, b3, *, batch_tile=8192,
                        out_dtype=jnp.float32):
    """Forward pass. Params must already be in kernel dtypes (see prepare_params):
    weights bf16 [in, out], biases f32 [1, out]. x may be f32 or bf16."""
    B, F = x.shape
    H1 = w1.shape[1]
    H2 = w2.shape[1]
    O = w3.shape[1]
    assert w1.shape[0] == F, "linear1 in_features must match x feature dim"
    assert w2.shape[0] == H1, (
        "linear2 contracts over linear1's output: module requires "
        "hidden_size1 == input_size (w2.shape[0] == w1.shape[1])")
    assert w3.shape[0] == H2, "linear3 in_features must match hidden_size2"

    cost = _cost_estimate(B, F, H1, H2, O, out_dtype)

    if B <= min(batch_tile, _SINGLE_SHOT_MAX_ROWS):
        # Small-batch (RL inference) path: everything VMEM-resident, no grid.
        vmem = pl.BlockSpec(memory_space=pltpu.MemorySpace.VMEM)
        return pl.pallas_call(
            _qnet_kernel,
            out_shape=jax.ShapeDtypeStruct((B, O), out_dtype),
            in_specs=[vmem] * 7,
            out_specs=vmem,
            cost_estimate=cost,
        )(x, w1, b1, w2, b2, w3, b3)

    # Batch-tiled grid path: weights/biases resident across iterations (index
    # map -> block (0,0)); x/out streamed TB rows per step and double-buffered
    # by the Pallas pipeline. TB is capped at ~ceil(B/2) so n_blk >= 2 and the
    # "parallel" batch axis can land one block on each v7x TensorCore.
    TB = min(batch_tile, max(_round_up(pl.cdiv(B, 2), 256), 256))
    n_blk = pl.cdiv(B, TB)   # ragged last block handled by Pallas, no jnp.pad

    return pl.pallas_call(
        _qnet_kernel,
        out_shape=jax.ShapeDtypeStruct((B, O), out_dtype),
        grid=(n_blk,),
        in_specs=[
            pl.BlockSpec((TB, F), lambda i: (i, 0)),
            pl.BlockSpec((F, H1), lambda i: (0, 0)),
            pl.BlockSpec((1, H1), lambda i: (0, 0)),
            pl.BlockSpec((H1, H2), lambda i: (0, 0)),
            pl.BlockSpec((1, H2), lambda i: (0, 0)),
            pl.BlockSpec((H2, O), lambda i: (0, 0)),
            pl.BlockSpec((1, O), lambda i: (0, 0)),
        ],
        out_specs=pl.BlockSpec((TB, O), lambda i: (i, 0)),
        cost_estimate=cost,
        compiler_params=pltpu.CompilerParams(
            dimension_semantics=("parallel",),
            vmem_limit_bytes=_vmem_limit_bytes(TB)),
    )(x, w1, b1, w2, b2, w3, b3)


def init_linear_params(key, in_features, out_features):
    """PyTorch nn.Linear default init: U(-1/sqrt(in), 1/sqrt(in)); f32."""
    kw, kb = jax.random.split(key)
    bound = 1.0 / (in_features ** 0.5)
    # stored as [in, out] (transposed vs. torch's [out, in])
    w = jax.random.uniform(kw, (in_features, out_features), jnp.float32,
                           minval=-bound, maxval=bound)
    b = jax.random.uniform(kb, (out_features,), jnp.float32,
                           minval=-bound, maxval=bound)
    return w, b


def prepare_params(w1, b1, w2, b2, w3, b3):
    """Cast/reshape params to kernel dtypes ONCE, outside the jitted forward:
    weights -> bf16 [in, out], biases -> f32 [1, out]."""
    def w(p):
        return jnp.asarray(p, jnp.bfloat16)

    def b(p):
        return jnp.asarray(p, jnp.float32).reshape(1, -1)

    return w(w1), b(b1), w(w2), b(b2), w(w3), b(b3)


def _ref_forward(x, w1, b1, w2, b2, w3, b3):
    h = jnp.maximum(x @ w1 + b1, 0.0)
    h = jnp.maximum(h @ w2 + b2, 0.0)
    return h @ w3 + b3


if __name__ == "__main__":
    # Sizes (hidden_size1 == input_size, required by the module's forward chain)
    input_size, hidden_size1, hidden_size2, output_size = 32, 32, 64, 4

    key = jax.random.PRNGKey(0)
    k_x1, k_x2, k_x3, k1, k2, k3 = jax.random.split(key, 6)

    w1, b1 = init_linear_params(k1, input_size, hidden_size1)
    w2, b2 = init_linear_params(k2, hidden_size1, hidden_size2)
    w3, b3 = init_linear_params(k3, hidden_size2, output_size)
    params = prepare_params(w1, b1, w2, b2, w3, b3)   # kernel dtypes, once

    # Path 1: small batch -> single fully-VMEM-resident invocation.
    x_small = jax.random.normal(k_x1, (8, input_size), jnp.float32)
    out_small = jax.block_until_ready(linear_qnet_forward(x_small, *params))
    ref_small = _ref_forward(x_small, w1, b1, w2, b2, w3, b3)
    assert out_small.shape == (8, output_size)
    assert jnp.allclose(out_small, ref_small, atol=5e-2, rtol=5e-2), (
        jnp.max(jnp.abs(out_small - ref_small)))

    # Path 2: batch-tiled grid with a tiny tile (exercises ragged last block,
    # no jnp.pad). Production default is batch_tile=8192.
    x_mid = jax.random.normal(k_x2, (60, input_size), jnp.float32)
    out_mid = jax.block_until_ready(
        linear_qnet_forward(x_mid, *params, batch_tile=16))
    ref_mid = _ref_forward(x_mid, w1, b1, w2, b2, w3, b3)
    assert out_mid.shape == (60, output_size)
    assert jnp.allclose(out_mid, ref_mid, atol=5e-2, rtol=5e-2), (
        jnp.max(jnp.abs(out_mid - ref_mid)))

    # Path 3: default tiled path (n_blk >= 2 so v7x uses both TensorCores,
    # ragged 88-row tail, vmem_limit_bytes set from the documented budget).
    x_big = jax.random.normal(k_x3, (600, input_size), jnp.float32)
    out_big = jax.block_until_ready(linear_qnet_forward(x_big, *params))
    ref_big = _ref_forward(x_big, w1, b1, w2, b2, w3, b3)
    assert out_big.shape == (600, output_size)
    assert jnp.allclose(out_big, ref_big, atol=5e-2, rtol=5e-2), (
        jnp.max(jnp.abs(out_big - ref_big)))

    print("KERNEL_OK")
</pallas_src>

<mosaic_0001>
module attributes {stable_mosaic.version = 11 : i64} {
  func.func @_qnet_kernel(%arg0: memref<8x32xf32, #tpu.memory_space<vmem>>, %arg1: memref<32x32xbf16, #tpu.memory_space<vmem>>, %arg2: memref<1x32xf32, #tpu.memory_space<vmem>>, %arg3: memref<32x64xbf16, #tpu.memory_space<vmem>>, %arg4: memref<1x64xf32, #tpu.memory_space<vmem>>, %arg5: memref<64x4xbf16, #tpu.memory_space<vmem>>, %arg6: memref<1x4xf32, #tpu.memory_space<vmem>>, %arg7: memref<8x4xf32, #tpu.memory_space<vmem>>) attributes {dimension_semantics = [], scalar_prefetch = 0 : i64, scratch_operands = 0 : i64, tpu.core_type = #tpu.core_type<tc>} {
    %c0 = arith.constant 0 : index
    %c0_0 = arith.constant 0 : index
    %0 = vector.load %arg0[%c0, %c0_0] : memref<8x32xf32, #tpu.memory_space<vmem>>, vector<8x32xf32>
    %1 = arith.truncf %0 : vector<8x32xf32> to vector<8x32xbf16>
    %c0_1 = arith.constant 0 : index
    %c0_2 = arith.constant 0 : index
    %2 = vector.load %arg1[%c0_1, %c0_2] : memref<32x32xbf16, #tpu.memory_space<vmem>>, vector<32x32xbf16>
    %cst = arith.constant dense<0.000000e+00> : vector<8x32xf32>
    %3 = tpu.matmul %1, %2, %cst {dimension_numbers = #tpu.dot_dimension_numbers<[1], [0], [0], [1], [0, 0, 1, 1], [], []>} : vector<8x32xbf16>, vector<32x32xbf16>, vector<8x32xf32> -> vector<8x32xf32>
    %c0_3 = arith.constant 0 : index
    %c0_4 = arith.constant 0 : index
    %4 = vector.load %arg2[%c0_3, %c0_4] : memref<1x32xf32, #tpu.memory_space<vmem>>, vector<1x32xf32>
    %5 = vector.broadcast %4 : vector<1x32xf32> to vector<8x32xf32>
    %6 = arith.addf %3, %5 : vector<8x32xf32>
    %cst_5 = arith.constant 0.000000e+00 : f32
    %7 = vector.broadcast %cst_5 : f32 to vector<8x32xf32>
    %8 = arith.maximumf %6, %7 : vector<8x32xf32>
    %9 = arith.truncf %8 : vector<8x32xf32> to vector<8x32xbf16>
    %c0_6 = arith.constant 0 : index
    %c0_7 = arith.constant 0 : index
    %10 = vector.load %arg3[%c0_6, %c0_7] : memref<32x64xbf16, #tpu.memory_space<vmem>>, vector<32x64xbf16>
    %cst_8 = arith.constant dense<0.000000e+00> : vector<8x64xf32>
    %11 = tpu.matmul %9, %10, %cst_8 {dimension_numbers = #tpu.dot_dimension_numbers<[1], [0], [0], [1], [0, 0, 1, 1], [], []>} : vector<8x32xbf16>, vector<32x64xbf16>, vector<8x64xf32> -> vector<8x64xf32>
    %c0_9 = arith.constant 0 : index
    %c0_10 = arith.constant 0 : index
    %12 = vector.load %arg4[%c0_9, %c0_10] : memref<1x64xf32, #tpu.memory_space<vmem>>, vector<1x64xf32>
    %13 = vector.broadcast %12 : vector<1x64xf32> to vector<8x64xf32>
    %14 = arith.addf %11, %13 : vector<8x64xf32>
    %cst_11 = arith.constant 0.000000e+00 : f32
    %15 = vector.broadcast %cst_11 : f32 to vector<8x64xf32>
    %16 = arith.maximumf %14, %15 : vector<8x64xf32>
    %17 = arith.truncf %16 : vector<8x64xf32> to vector<8x64xbf16>
    %c0_12 = arith.constant 0 : index
    %c0_13 = arith.constant 0 : index
    %18 = vector.load %arg5[%c0_12, %c0_13] : memref<64x4xbf16, #tpu.memory_space<vmem>>, vector<64x4xbf16>
    %cst_14 = arith.constant dense<0.000000e+00> : vector<8x4xf32>
    %19 = tpu.matmul %17, %18, %cst_14 {dimension_numbers = #tpu.dot_dimension_numbers<[1], [0], [0], [1], [0, 0, 1, 1], [], []>} : vector<8x64xbf16>, vector<64x4xbf16>, vector<8x4xf32> -> vector<8x4xf32>
    %c0_15 = arith.constant 0 : index
    %c0_16 = arith.constant 0 : index
    %20 = vector.load %arg6[%c0_15, %c0_16] : memref<1x4xf32, #tpu.memory_space<vmem>>, vector<1x4xf32>
    %21 = vector.broadcast %20 : vector<1x4xf32> to vector<8x4xf32>
    %22 = arith.addf %19, %21 : vector<8x4xf32>
    %c0_17 = arith.constant 0 : index
    %c0_18 = arith.constant 0 : index
    %23 = vector.load %arg7[%c0_17, %c0_18] : memref<8x4xf32, #tpu.memory_space<vmem>>, vector<8x4xf32>
    tpu.vector_store %arg7[%c0_17, %c0_18], %22 {strides = array<i32>} : memref<8x4xf32, #tpu.memory_space<vmem>>, vector<8x4xf32>,
    return
  }
}

</mosaic_0001>

<bundles_post_ra>
// kernel: linear_qnet_forward.1
= control target key start
LH: loop header
LB: loop body
LE: loop exit
PB: predicated region body
PF: predicated region fallthrough
CT: control target
= control target key end

     0   :  { %12 = vsyncpa [#allocation3], 0  ;;  %s354_s24 = smov [#allocation2]   ;;  %s441_s0 = inlined_call_operand.hbm [shape: f32[8,32], index: 0, kind: input, shape index: {}]   ;;  %s442_s1 = inlined_call_operand.vmem [shape: bf16[32,32], index: 1, kind: input, shape index: {}]   ;;  %s443_s2 = inlined_call_operand.vmem [shape: f32[1,32], index: 2, kind: input, shape index: {}]   ;;  %s444_s3 = inlined_call_operand.vmem [shape: bf16[32,64], index: 3, kind: input, shape index: {}]   ;;  %s445_s4 = inlined_call_operand.vmem [shape: f32[1,64], index: 4, kind: input, shape index: {}]   ;;  %s446_s5 = inlined_call_operand.vmem [shape: bf16[64,4], index: 5, kind: input, shape index: {}]   ;;  %s447_s6 = inlined_call_operand.vmem [shape: f32[1,4], index: 6, kind: input, shape index: {}]   ;;  %s448_s7 = inlined_call_operand.vmem [shape: f32[8,4], index: 7, kind: output, shape index: {}]  }
   0x1   :  { %s19_s25 = sshll.u32 %s354_s24, 4  ;;  %s20_s25 = int_to_ptr.vmem [resolvable:$true] %s19_s25 }
   0x2   :  { %s340_s26 = scalar_lea.vmem %s20_s25, 128  ;;  %p345_p1 = scmp.lt.s32.totalorder %s20_s25, %s20_s25 }
   0x3   :  { %p341_p0 = scmp.ne.s32.totalorder %s20_s25, %s340_s26  ;;  %p346_p2 = scmp.lt.s32.totalorder %s340_s26, %s340_s26 }
   0x5   :  { %p347_p3 = por %p346_p2, %p345_p1 }
   0x7   :  { %p348_p4 = pnand %p347_p3, %p341_p0 }
   0x9   :  { %351 = shalt.err (!%p348_p4)
}
   0xa   :  { %22 = dma.hbm_to_vmem [thread:$0]  %s441_s0, 128, %s20_s25, [#allocation3]  }
   0xb   :  { %352 = dma.done.wait [#allocation3], 128  }
   0xc   :  { %353 = vsyncadd [#allocation3], 4294967168  ;;  %v355_v0 = vmov 0.0   ;;  %vm356_vm0 = vmmov 0   ;;  %v324_v1 = vld [vmem:[%s442_s1 + $0x8] sm:$0xff]   ;;  %v325_v2 = vld [vmem:[%s442_s1] sm:$0xff]  }
   0xd   :  { %293 = vmatprep.subr.bf16.mxu1 %v355_v0  ;;  %297 = vmatprep.mubr.msk.bf16.mxu1 %vm356_vm0, %v355_v0  ;;  %v39_v3 = vld [vmem:[#allocation2] sm:$0xff]  ;;  %vm64_vm1 = vcmask 261120   ;;  %v326_v4 = vld [vmem:[%s444_s3 + $0x8] sm:$0xff]   ;;  %v328_v7 = vld [vmem:[%s446_s5 + $0x18] sm:$0xff]   ;;  %vm217_vm2 = vcmask 523264   ;;  %vm261_vm3 = vcmask 31744  }
   0xe   :  { %309 = vmatprep.subr.bf16.mxu0 %v355_v0  ;;  %317 = vmatprep.mubr.msk.bf16.mxu0 %vm356_vm0, %v355_v0  ;;  %v40_v5 = vpack.c.bf16 %v39_v3, %v39_v3  ;;  %v327_v6 = vld [vmem:[%s444_s3] sm:$0xff]   ;;  %v329_v8 = vld [vmem:[%s446_s5 + $0x10] sm:$0xff]   ;;  %v330_v17 = vld [vmem:[%s446_s5 + $0x8] sm:$0xff]  }
   0xf   :  { %294 = vmatpush3.bf16.msra.mxu1 %v324_v1  ;;  %310 = vmatpush3.bf16.msra.mxu0 %v328_v7  ;;  %v268_v9 = vld [vmem:[%s443_s2] ss:$0 sm:$0xff] }
  0x10   :  { %295 = vmatprep.subr.bf16.mxu1 %v355_v0  ;;  %311 = vmatprep.subr.bf16.mxu0 %v355_v0  ;;  %v331_v18 = vld [vmem:[%s446_s5] sm:$0xff]  }
  0x11   :  { %v272_v19 = vld [vmem:[%s445_s4] ss:$0 sm:$0xff] }
  0x12   :  { %v276_v27 = vld [vmem:[%s447_s6] ss:$0 sm:$0xff] }
  0x13   :  { %296 = vmatpush3.bf16.msra.mxu1 %v325_v2  ;;  %312 = vmatpush3.bf16.msra.mxu0 %v329_v8 }
  0x14   :  { %301 = vmatprep.subr.bf16.mxu1 %v355_v0  ;;  %313 = vmatprep.subr.bf16.mxu0 %v355_v0 }
  0x16   :  { %298 = vmatmul.mubr.msk.bf16.vlgmr.msra.gmra.mxu1 %vm64_vm1, %v40_v5 }
  0x17   :  { %302 = vmatpush3.bf16.msra.mxu1 %v326_v4  ;;  %305 = vmatprep.mubr.msk.bf16.mxu1 %vm356_vm0, %v355_v0 }
  0x18   :  { %303 = vmatprep.subr.bf16.mxu1 %v355_v0  ;;  %314 = vmatpush3.bf16.msra.mxu0 %v330_v17 }
  0x19   :  { %315 = vmatprep.subr.bf16.mxu0 %v355_v0 }
  0x1b   :  { %304 = vmatpush3.bf16.msra.mxu1 %v327_v6 }
  0x1c   :  { %316 = vmatpush3.bf16.msra.mxu0 %v331_v18 }
  0xd6   :  { %v102_v10 = vpop.f32.mrf.mxu1 }
  0xd7   :  { %v103_v11 = vadd.f32 %v268_v9, %v102_v10 }
  0xd8   :  { %v299_v12 = vpop.f32.mrf.mxu1 }
  0xd9   :  { %v108_v13 = vmax.f32 %v103_v11, 0.0 }
  0xda   :  { %v105_v14 = vpop.f32.mrf.mxu1 }
  0xdb   :  { %v109_v15 = vpack.c.bf16 %v108_v13, %v108_v13 }
  0xdc   :  { %v300_v16 = vpop.f32.mrf.mxu1 }
  0xdd   :  { %306 = vmatmul.mubr.msk.bf16.vlgmr.msra.gmra.mxu1 %vm64_vm1, %v109_v15 }
 0x19d   :  { %v170_v20 = vpop.f32.mrf.mxu1 }
 0x19e   :  { %v171_v21 = vadd.f32 %v272_v19, %v170_v20 }
 0x19f   :  { %v307_v22 = vpop.f32.mrf.mxu1 }
 0x1a0   :  { %v176_v23 = vmax.f32 %v171_v21, 0.0 }
 0x1a1   :  { %v173_v24 = vpop.f32.mrf.mxu1 }
 0x1a2   :  { %v177_v25 = vpack.c.bf16 %v176_v23, %v176_v23 }
 0x1a3   :  { %v308_v26 = vpop.f32.mrf.mxu1 }
 0x1a4   :  { %318 = vmatmul.mubr.msk.bf16.vlgmr.msra.gmra.mxu0 %vm217_vm2, %v177_v25 }
 0x264   :  { %v255_v28 = vpop.f32.mrf.mxu0 }
 0x265   :  { %v256_v29 = vadd.f32 %v276_v27, %v255_v28 }
 0x266   :  { %v319_v30 = vpop.f32.mrf.mxu0 }
 0x267   :  { %262 = vst.msk [vmem:[%s448_s7] sm:$0xff] %vm261_vm3, %v256_v29 }
 0x268   :  { %v258_v31 = vpop.f32.mrf.mxu0 }
 0x26a   :  { %v320_v32 = vpop.f32.mrf.mxu0 }
 0x26b   :  { %267 = vsyncpa [#allocation3], 1 }

</bundles_post_ra>
